<compile_context>
chip_gen: v7x
topology: tpu7x:2x2x1
jax: 0.10.0
libtpu: 0.0.40
codegen_flags: <defaults>
</compile_context>

<pallas_src>
import jax
import jax.numpy as jnp
from jax.experimental import pallas as pl
from jax.experimental.pallas import tpu as pltpu


def self_attention_kernel(x_ref, w_ref, len_ref, rep_ref, att_ref):
    x = x_ref[...]                                   # (TB, L, H) f32
    w = w_ref[...]                                   # (1, H)     f32
    tb, L, H = x.shape

    # scores[b, l] = sum_h x[b, l, h] * w[h]  (VPU mul + lane reduction; no
    # N=1 MXU matvec / column->row relayout).
    scores = jnp.sum(x * w.reshape(1, 1, H), axis=-1)            # (TB, L)

    # relu + fused masked softmax: softmax -> mask -> renormalize is
    # algebraically identical to masking before a single normalization.
    s = jnp.maximum(scores, 0.0)
    m = jnp.max(s, axis=-1, keepdims=True)
    idx = jax.lax.broadcasted_iota(jnp.int32, (tb, L), 1)
    mask = (idx < len_ref[...]).astype(jnp.float32)              # (TB, L)
    p = jnp.exp(s - m) * mask
    denom = jnp.sum(p, axis=-1, keepdims=True)
    att = p * pl.reciprocal(denom)                   # exact reciprocal (1e-5 tol)
    att_ref[...] = att

    # rep[b, h] = sum_l att[b, l] * x[b, l, h]
    # VPU multiply + sublane reduction: ~2 VALU ops/element, streams through
    # vregs and stays hidden under the HBM DMA (replaces the q=1 MXU einsum).
    rep_ref[...] = jnp.sum(x * att[:, :, None], axis=1)          # (TB, H)


def _round_up(x, m):
    return ((x + m - 1) // m) * m


def _vmem_config():
    """Generation-aware (per-buffer x-tile budget, scoped vmem limit)."""
    try:
        cap = pltpu.get_tpu_info().vmem_capacity_bytes
    except Exception:
        cap = 64 * 1024 * 1024          # conservative (v7x-sized) fallback
    budget = cap // 5                   # ~12.8 MiB on v7x, ~25.6 MiB on v5e/v6e
    limit = (cap * 5) // 8              # ~40 MiB on v7x,  ~80 MiB on v5e/v6e
    return budget, limit


def _pick_batch_tile(B, L, H, budget_bytes):
    """Largest batch tile whose *padded* x block fits one pipeline buffer."""
    # Mosaic pads the last two dims of the (TB, L, H) block to (8, 128)
    # granules, so budget against the padded footprint, not logical bytes.
    padded_row_bytes = _round_up(L, 8) * _round_up(H, 128) * 4
    tb = budget_bytes // padded_row_bytes
    if tb < 1:
        # A single padded row exceeds the per-buffer budget: stream one row
        # per grid step rather than blowing past vmem_limit_bytes.
        # TODO(synk): for very long sequences add an L ("arbitrary") grid axis
        # with a VMEM accumulator instead of relying on one row fitting.
        return 1
    if tb >= B:
        # Whole batch fits in one tile. For B > 8 keep >= 2 multiple-of-8 grid
        # steps so dimension_semantics=("parallel",) can shard across v7x's
        # two TensorCores; for tiny batches the megacore win is negligible and
        # full-extent blocks are the safest layout.
        if B > 8:
            return min(_round_up(-(-B // 2), 8), B)
        return B
    if tb >= 8:
        tb = (tb // 8) * 8              # sublane-granule batch tiles
    return tb


def self_attention(inputs, att_weights, lengths):
    """inputs: (B, L, H) f32, att_weights: (1, H) f32, lengths: (B,) int."""
    B, L, H = inputs.shape
    lengths2d = lengths.reshape(B, 1).astype(jnp.int32)
    budget_bytes, vmem_limit = _vmem_config()
    TB = _pick_batch_tile(B, L, H, budget_bytes)

    rep, att = pl.pallas_call(
        self_attention_kernel,
        out_shape=(
            jax.ShapeDtypeStruct((B, H), jnp.float32),
            jax.ShapeDtypeStruct((B, L), jnp.float32),
        ),
        grid=(pl.cdiv(B, TB),),
        in_specs=[
            pl.BlockSpec((TB, L, H), lambda b: (b, 0, 0)),   # batch tile of x
            pl.BlockSpec((1, H), lambda b: (0, 0)),          # full weights
            pl.BlockSpec((TB, 1), lambda b: (b, 0)),         # per-tile lengths
        ],
        out_specs=(
            pl.BlockSpec((TB, H), lambda b: (b, 0)),
            pl.BlockSpec((TB, L), lambda b: (b, 0)),
        ),
        compiler_params=pltpu.CompilerParams(
            dimension_semantics=("parallel",),               # megacore split on v7x
            vmem_limit_bytes=vmem_limit,
        ),
    )(inputs, att_weights, lengths2d)
    return rep, att


def _reference(inputs, att_weights, lengths):
    """Pure-JAX reference mirroring the PyTorch forward."""
    B, L, H = inputs.shape
    scores = jnp.einsum("blh,oh->bl", inputs, att_weights)
    s = jnp.maximum(scores, 0.0)
    sm = jax.nn.softmax(s, axis=-1)
    idx = jnp.arange(L)[None, :]
    mask = (idx < lengths[:, None]).astype(jnp.float32)
    masked = sm * mask
    att = masked / jnp.sum(masked, axis=-1, keepdims=True)
    rep = jnp.sum(inputs * att[:, :, None], axis=1)
    return rep, att


if __name__ == "__main__":
    B, L, H = 2, 8, 32

    key = jax.random.PRNGKey(0)
    k_x, k_w = jax.random.split(key)

    # Deterministic inputs
    x = jax.random.normal(k_x, (B, L, H), dtype=jnp.float32)
    lengths = jnp.array([5, 8], dtype=jnp.int32)

    # Xavier-uniform init for att_weights of shape (1, H):
    # fan_in = H, fan_out = 1 -> bound = sqrt(6 / (H + 1))
    bound = (6.0 / (H + 1)) ** 0.5
    att_weights = jax.random.uniform(
        k_w, (1, H), dtype=jnp.float32, minval=-bound, maxval=bound
    )

    rep, att = self_attention(x, att_weights, lengths)
    rep = jax.block_until_ready(rep)
    att = jax.block_until_ready(att)

    rep_ref, att_ref = _reference(x, att_weights, lengths)
    assert jnp.allclose(rep, rep_ref, atol=1e-5, rtol=1e-5)
    assert jnp.allclose(att, att_ref, atol=1e-5, rtol=1e-5)

    print("KERNEL_OK")
</pallas_src>

<mosaic_0001>
module attributes {stable_mosaic.version = 11 : i64} {
  func.func @self_attention_kernel(%arg0: i32, %arg1: memref<2x8x32xf32, #tpu.memory_space<vmem>>, %arg2: memref<1x32xf32, #tpu.memory_space<vmem>>, %arg3: memref<2x1xi32, #tpu.memory_space<vmem>>, %arg4: memref<2x32xf32, #tpu.memory_space<vmem>>, %arg5: memref<2x8xf32, #tpu.memory_space<vmem>>) attributes {dimension_semantics = [#tpu.dimension_semantics<parallel>], iteration_bounds = array<i64: 1>, scalar_prefetch = 0 : i64, scratch_operands = 0 : i64, tpu.core_type = #tpu.core_type<tc>, window_params = [{transform_indices = @transform_0, window_bounds = array<i64: 2, 8, 32>}, {pipeline_mode = #tpu.pipeline_mode<synchronous>, transform_indices = @transform_1, window_bounds = array<i64: 1, 32>}, {transform_indices = @transform_2, window_bounds = array<i64: 2, 1>}, {transform_indices = @transform_3, window_bounds = array<i64: 2, 32>}, {transform_indices = @transform_4, window_bounds = array<i64: 2, 8>}]} {
    %c0 = arith.constant 0 : index
    %c0_0 = arith.constant 0 : index
    %c0_1 = arith.constant 0 : index
    %0 = vector.load %arg1[%c0, %c0_0, %c0_1] : memref<2x8x32xf32, #tpu.memory_space<vmem>>, vector<2x8x32xf32>
    %c0_2 = arith.constant 0 : index
    %c0_3 = arith.constant 0 : index
    %1 = vector.load %arg2[%c0_2, %c0_3] : memref<1x32xf32, #tpu.memory_space<vmem>>, vector<1x32xf32>
    %2 = vector.shape_cast %1 : vector<1x32xf32> to vector<1x1x32xf32>
    %3 = vector.broadcast %2 : vector<1x1x32xf32> to vector<2x8x32xf32>
    %4 = arith.mulf %0, %3 : vector<2x8x32xf32>
    %cst = arith.constant dense<0.000000e+00> : vector<2x8xf32>
    %5 = vector.multi_reduction <add>, %4, %cst [2] : vector<2x8x32xf32> to vector<2x8xf32>
    %cst_4 = arith.constant 0.000000e+00 : f32
    %6 = vector.broadcast %cst_4 : f32 to vector<2x8xf32>
    %7 = arith.maximumf %5, %6 : vector<2x8xf32>
    %cst_5 = arith.constant dense<0xFF800000> : vector<2xf32>
    %8 = vector.multi_reduction <maximumf>, %7, %cst_5 [1] : vector<2x8xf32> to vector<2xf32>
    %9 = vector.shape_cast %8 : vector<2xf32> to vector<2x1xf32>
    %10 = tpu.iota {dimensions = array<i32: 1>} : vector<2x8xi32>
    %c0_6 = arith.constant 0 : index
    %c0_7 = arith.constant 0 : index
    %11 = vector.load %arg3[%c0_6, %c0_7] : memref<2x1xi32, #tpu.memory_space<vmem>>, vector<2x1xi32>
    %12 = vector.broadcast %11 : vector<2x1xi32> to vector<2x8xi32>
    %13 = arith.cmpi slt, %10, %12 : vector<2x8xi32>
    %14 = arith.extui %13 : vector<2x8xi1> to vector<2x8xi32>
    %15 = arith.sitofp %14 : vector<2x8xi32> to vector<2x8xf32>
    %16 = vector.broadcast %9 : vector<2x1xf32> to vector<2x8xf32>
    %17 = arith.subf %7, %16 : vector<2x8xf32>
    %18 = math.exp %17 : vector<2x8xf32>
    %19 = arith.mulf %18, %15 : vector<2x8xf32>
    %cst_8 = arith.constant dense<0.000000e+00> : vector<2xf32>
    %20 = vector.multi_reduction <add>, %19, %cst_8 [1] : vector<2x8xf32> to vector<2xf32>
    %21 = vector.shape_cast %20 : vector<2xf32> to vector<2x1xf32>
    %22 = tpu.reciprocal %21 : vector<2x1xf32> -> vector<2x1xf32>
    %23 = vector.broadcast %22 : vector<2x1xf32> to vector<2x8xf32>
    %24 = arith.mulf %19, %23 : vector<2x8xf32>
    %c0_9 = arith.constant 0 : index
    %c0_10 = arith.constant 0 : index
    %25 = vector.load %arg5[%c0_9, %c0_10] : memref<2x8xf32, #tpu.memory_space<vmem>>, vector<2x8xf32>
    tpu.vector_store %arg5[%c0_9, %c0_10], %24 {strides = array<i32>} : memref<2x8xf32, #tpu.memory_space<vmem>>, vector<2x8xf32>,
    %26 = vector.shape_cast %24 : vector<2x8xf32> to vector<2x8x1xf32>
    %27 = vector.broadcast %26 : vector<2x8x1xf32> to vector<2x8x32xf32>
    %28 = arith.mulf %0, %27 : vector<2x8x32xf32>
    %cst_11 = arith.constant dense<0.000000e+00> : vector<2x32xf32>
    %29 = vector.multi_reduction <add>, %28, %cst_11 [1] : vector<2x8x32xf32> to vector<2x32xf32>
    %c0_12 = arith.constant 0 : index
    %c0_13 = arith.constant 0 : index
    %30 = vector.load %arg4[%c0_12, %c0_13] : memref<2x32xf32, #tpu.memory_space<vmem>>, vector<2x32xf32>
    tpu.vector_store %arg4[%c0_12, %c0_13], %29 {strides = array<i32>} : memref<2x32xf32, #tpu.memory_space<vmem>>, vector<2x32xf32>,
    return
  }
  func.func @transform_0(%arg0: i32) -> (i32, i32, i32) {
    %c0_i32 = arith.constant 0 : i32
    %c0_i32_0 = arith.constant 0 : i32
    %c0_i32_1 = arith.constant 0 : i32
    return %arg0, %c0_i32, %c0_i32_0 : i32, i32, i32
  }
  func.func @transform_1(%arg0: i32) -> (i32, i32) {
    %c0_i32 = arith.constant 0 : i32
    %c0_i32_0 = arith.constant 0 : i32
    %c0_i32_1 = arith.constant 0 : i32
    return %c0_i32, %c0_i32_0 : i32, i32
  }
  func.func @transform_2(%arg0: i32) -> (i32, i32) {
    %c0_i32 = arith.constant 0 : i32
    %c0_i32_0 = arith.constant 0 : i32
    return %arg0, %c0_i32 : i32, i32
  }
  func.func @transform_3(%arg0: i32) -> (i32, i32) {
    %c0_i32 = arith.constant 0 : i32
    %c0_i32_0 = arith.constant 0 : i32
    return %arg0, %c0_i32 : i32, i32
  }
  func.func @transform_4(%arg0: i32) -> (i32, i32) {
    %c0_i32 = arith.constant 0 : i32
    %c0_i32_0 = arith.constant 0 : i32
    return %arg0, %c0_i32 : i32, i32
  }
}

</mosaic_0001>

<bundles_post_ra>
// kernel: tpu_custom_call.1
= control target key start
LH: loop header
LB: loop body
LE: loop exit
PB: predicated region body
PF: predicated region fallthrough
CT: control target
= control target key end

     0   :  { %10 = vsyncpa [#allocation3], 0  ;;  %s403_s0 = inlined_call_operand.hbm [shape: f32[2,8,32], index: 0, kind: input, shape index: {}]   ;;  %s404_s1 = inlined_call_operand.vmem [shape: f32[1,32], index: 1, kind: input, shape index: {}]   ;;  %s405_s2 = inlined_call_operand.vmem [shape: s32[2,1], index: 2, kind: input, shape index: {}]   ;;  %s406_s3 = inlined_call_operand.hbm [shape: f32[2,32], index: 3, kind: output, shape index: {0}]   ;;  %s407_s4 = inlined_call_operand.hbm [shape: f32[2,8], index: 4, kind: output, shape index: {1}]  }
   0x1   :  { %11 = vsyncpa [#allocation4], 0 }
   0x2   :  { %12 = vsyncpa [#allocation7], 0  ;;  %s310_s15 = smov [#allocation2]   ;;  %s238_s19 = scalar_lea.hbm %s403_s0, 256 }
   0x3   :  { %s18_s16 = sshll.u32 %s310_s15, 4  ;;  %p239_p0 = scmp.ne.s32.totalorder %s403_s0, %s238_s19  ;;  %s19_s16 = int_to_ptr.vmem [resolvable:$true] %s18_s16 }
   0x4   :  { %p242_p1 = scmp.lt.u32.totalorder %s238_s19, %s403_s0 }
   0x6   :  { %p244_p2 = pnand %p242_p1, %p239_p0 }
   0x8   :  { %247 = shalt.err (!%p244_p2)
}
   0x9   :  { %s248_s24 = scalar_lea.vmem %s19_s16, 256  ;;  %p253_p4 = scmp.lt.s32.totalorder %s19_s16, %s19_s16 }
   0xa   :  { %p249_p3 = scmp.ne.s32.totalorder %s19_s16, %s248_s24  ;;  %p254_p5 = scmp.lt.s32.totalorder %s248_s24, %s248_s24 }
   0xc   :  { %p255_p6 = por %p254_p5, %p253_p4 }
   0xe   :  { %p256_p7 = pnand %p255_p6, %p249_p3 }
  0x10   :  { %259 = shalt.err (!%p256_p7)
}
  0x11   :  { %s311_s25 = smov 128   ;;  %s312_s26 = smov 8  }
  0x12   :  { %24 = dma.hbm_to_vmem [thread:$0]  %s403_s0, 256, %s19_s16, [#allocation3], %s311_s25, %s311_s25, %s312_s26  }
  0x13   :  { %304 = dma.done.wait [#allocation3], 256  }
  0x14   :  { %305 = vsyncadd [#allocation3], 4294967040  ;;  %v313_v0 = vmov 0   ;;  %v354_v1 = vld [vmem:[#allocation2] sm:$0xff]  ;;  %vm43_vm0 = vcmask 261120   ;;  %v359_v3 = vld [vmem:[#allocation2 + $0x8] sm:$0xff]  ;;  %v54_v9 = vlaneseq }
  0x15   :  { %230 = vset.pattern.permute.xlu1 %v313_v0  ;;  %231 = vset.pattern.permute.xlu0 %v313_v0  ;;  %v221_v2 = vld [vmem:[%s404_s1] ss:$0 sm:$0xff]  ;;  %v314_v15 = vmov 0.0   ;;  %vm64_vm2 = vcmask 1041409   ;;  %vm67_vm3 = vcmask 58368   ;;  %s315_s1 = smov [#allocation6]  }
  0x16   :  { %v41_v4 = vmul.f32 %v221_v2, %v354_v1  ;;  %v42_v5 = vmul.f32 %v221_v2, %v359_v3  ;;  %v71_v6 = vld [vmem:[%s405_s2] sm:$0x3]  ;;  %v57_v10 = vshrl.u32 %v54_v9, 7  ;;  %v55_v11 = vand.u32 127, %v54_v9  ;;  %s208_s2 = sshll.u32 %s315_s1, 4  ;;  %s209_s2 = int_to_ptr.vmem [resolvable:$true] %s208_s2 }
  0x17   :  { %73 = vperm.xlu1 %230, %v71_v6   ;;  %s260_s6 = scalar_lea.vmem %s209_s2, 32  ;;  %p265_p9 = scmp.lt.s32.totalorder %s209_s2, %s209_s2 }
  0x18   :  { %v44_v7 = vsel %vm43_vm0, %v41_v4, 0.0  ;;  %v47_v8 = vsel %vm43_vm0, %v42_v5, 0.0  ;;  %v81_v12 = vsub.s32 0, %v57_v10  ;;  %v85_v14 = vsub.s32 1, %v57_v10  ;;  %p261_p8 = scmp.ne.s32.totalorder %s209_s2, %s260_s6  ;;  %p266_p10 = scmp.lt.s32.totalorder %s260_s6, %s260_s6 }
  0x19   :  { %45 = vadd.xlane.f32.xlu0 %v44_v7  ;;  %v58_v20 = vsub.s32 %v55_v11, %v57_v10 }
  0x1a   :  { %p267_p11 = por %p266_p10, %p265_p9 }
  0x1c   :  { %p268_p12 = pnand %p267_p11, %p261_p8 }
  0x1d   :  { %48 = vadd.xlane.f32.xlu0 %v47_v8 }
  0x96   :  { %v74_v13 = vpop.permute.xlu1 %73 }
  0x97   :  { %vm75_vm1 = vcmp.lt.s32.totalorder %v55_v11, %v74_v13 }
  0x98   :  { %v222_v16 = vsel %vm75_vm1, 1.0, %v314_v15 }
  0x99   :  { %v99_v17 = vrot.slane %v222_v16, %v81_v12  ;;  %v106_v18 = vrot.slane %v222_v16, %v85_v14 }
  0x9b   :  { %101 = vbcast.lane.b32.xlu0 %v99_v17, 256 }
  0x9f   :  { %108 = vbcast.lane.b32.xlu0 %v106_v18, 256 }
  0xa6   :  { %v46_v19 = vpop.xlane.xlu0 %45 }
  0xa7   :  { %v50_v21 = vmax.f32 %v46_v19, 0.0 }
  0xa9   :  { %v59_v24 = vrot.slane %v50_v21, %v58_v20 }
  0xaa   :  { %v49_v22 = vpop.xlane.xlu0 %48 }
  0xab   :  { %v51_v23 = vmax.f32 %v49_v22, 0.0 }
  0xad   :  { %v63_v25 = vrot.slane %v51_v23, %v58_v20 }
  0xaf   :  { %v65_v26 = vsel %vm64_vm2, %v63_v25, %v59_v24 }
  0xb0   :  { %v68_v27 = vsel %vm67_vm3, %v65_v26, -inf }
  0xb1   :  { %69 = vmax.xlane.f32.xlu1 %v68_v27 }
 0x10d   :  { %v102_v35 = vpop.permute.xlu0 %101 }
 0x111   :  { %v109_v39 = vpop.permute.xlu0 %108 }
 0x13e   :  { %v70_v28 = vpop.xlane.xlu1 %69 }
 0x13f   :  { %v82_v29 = vrot.slane %v70_v28, %v81_v12  ;;  %v86_v30 = vrot.slane %v70_v28, %v85_v14 }
 0x141   :  { %v89_v31 = vsub.f32 %v50_v21, %v82_v29  ;;  %v90_v32 = vsub.f32 %v51_v23, %v86_v30 }
 0x143   :  { %v91_v33 = vmul.f32 1.442695, %v89_v31  ;;  %v93_v34 = vmul.f32 1.442695, %v90_v32 }
 0x145   :  { %232 = vpow2.f32 %v91_v33 }
 0x146   :  { %234 = vpow2.f32 %v93_v34 }
 0x14f   :  { %v233_v36 = vpop.eup %232 }
 0x150   :  { %v235_v37 = vpop.eup %234  ;;  %v112_v38 = vmul.f32 %v233_v36, %v102_v35 }
 0x151   :  { %v113_v40 = vmul.f32 %v235_v37, %v109_v39 }
 0x152   :  { %117 = vperm.xlu0 %231, %v112_v38  }
 0x153   :  { %120 = vperm.xlu1 %230, %v113_v40  }
 0x1d1   :  { %v118_v41 = vpop.permute.xlu0 %117 }
 0x1d2   :  { %v121_v42 = vpop.permute.xlu1 %120  ;;  %v125_v43 = vrot.slane %v118_v41, %v58_v20 }
 0x1d3   :  { %v129_v44 = vrot.slane %v121_v42, %v58_v20 }
 0x1d5   :  { %v130_v45 = vsel %vm64_vm2, %v129_v44, %v125_v43 }
 0x1d6   :  { %v132_v46 = vsel %vm67_vm3, %v130_v45, 0.0 }
 0x1d7   :  { %133 = vadd.xlane.f32.xlu0 %v132_v46 }
 0x264   :  { %v134_v47 = vpop.xlane.xlu0 %133 }
 0x265   :  { %236 = vrcp.f32 %v134_v47 }
 0x26f   :  { %v237_v48 = vpop.eup %236 }
 0x270   :  { %v140_v49 = vrot.slane %v237_v48, %v81_v12  ;;  %v144_v51 = vrot.slane %v237_v48, %v85_v14 }
 0x272   :  { %v147_v50 = vmul.f32 %v140_v49, %v112_v38  ;;  %v148_v52 = vmul.f32 %v144_v51, %v113_v40 }
 0x274   :  { %152 = vperm.xlu1 %230, %v147_v50  }
 0x278   :  { %155 = vperm.xlu1 %230, %v148_v52  }
 0x2f3   :  { %v153_v53 = vpop.permute.xlu1 %152 }
 0x2f4   :  { %v170_v54 = vmul.f32 %v153_v53, %v354_v1  ;;  %v160_v58 = vrot.slane %v153_v53, %v58_v20 }
 0x2f6   :  { %v172_v55 = vsel %vm43_vm0, %v170_v54, 0.0 }
 0x2f7   :  { %v173_v56 = vrot.slane %v172_v55, 4  ;;  %v156_v57 = vpop.permute.xlu1 %155 }
 0x2f8   :  { %v164_v59 = vrot.slane %v156_v57, %v58_v20  ;;  %v171_v60 = vmul.f32 %v156_v57, %v359_v3 }
 0x2f9   :  { %v174_v61 = vadd.f32 %v173_v56, %v172_v55 }
 0x2fa   :  { %v179_v62 = vsel %vm43_vm0, %v171_v60, 0.0  ;;  %v165_v63 = vsel %vm64_vm2, %v164_v59, %v160_v58 }
 0x2fb   :  { %v175_v0 = vrot.slane %v174_v61, 2  ;;  %v180_v2 = vrot.slane %v179_v62, 4  ;;  %167 = vst.msk [vmem:[#allocation6] sm:$0x3] %vm67_vm3, %v165_v63 }
 0x2fc   :  { %271 = shalt.err (!%p268_p12)
}
 0x2fd   :  { %s272_s9 = scalar_lea.hbm %s407_s4, 32 }
 0x2fe   :  { %p273_p13 = scmp.ne.s32.totalorder %s407_s4, %s272_s9  ;;  %p276_p0 = scmp.lt.u32.totalorder %s272_s9, %s407_s4 }
 0x300   :  { %p278_p1 = pnand %p276_p0, %p273_p13 }
 0x302   :  { %281 = shalt.err (!%p278_p1)
}
 0x303   :  { %211 = dma.vmem_to_hbm [thread:$0]  %s209_s2, 32, %s407_s4, [#allocation7]   ;;  %v176_v1 = vadd.f32 %v175_v0, %v174_v61  ;;  %v181_v3 = vadd.f32 %v180_v2, %v179_v62  ;;  %vm190_vm4 = vcmask 254976  }
 0x304   :  { %s316_s16 = smov [#allocation5]  }
 0x305   :  { %v182_v4 = vrot.slane %v181_v3, 2  ;;  %v177_v5 = vrot.slane %v176_v1, 1  ;;  %s198_s17 = sshll.u32 %s316_s16, 4  ;;  %s199_s17 = int_to_ptr.vmem [resolvable:$true] %s198_s17 }
 0x306   :  { %s282_s18 = scalar_lea.vmem %s199_s17, 32  ;;  %p287_p3 = scmp.lt.s32.totalorder %s199_s17, %s199_s17 }
 0x307   :  { %v183_v6 = vadd.f32 %v182_v4, %v181_v3  ;;  %v178_v9 = vadd.f32 %v177_v5, %v176_v1  ;;  %p283_p2 = scmp.ne.s32.totalorder %s199_s17, %s282_s18  ;;  %p288_p4 = scmp.lt.s32.totalorder %s282_s18, %s282_s18 }
 0x309   :  { %v184_v7 = vrot.slane %v183_v6, 1  ;;  %p289_p5 = por %p288_p4, %p287_p3 }
 0x30b   :  { %v185_v8 = vadd.f32 %v184_v7, %v183_v6  ;;  %p290_p6 = pnand %p289_p5, %p283_p2 }
 0x30d   :  { %v188_v10 = vsel %vm64_vm2, %v185_v8, %v178_v9 }
 0x30e   :  { %191 = vst.msk [vmem:[#allocation5] sm:$0x3] %vm190_vm4, %v188_v10 }
 0x30f   :  { %293 = shalt.err (!%p290_p6)
}
 0x310   :  { %s294_s20 = scalar_lea.hbm %s406_s3, 32 }
 0x311   :  { %p295_p7 = scmp.ne.s32.totalorder %s406_s3, %s294_s20  ;;  %p298_p8 = scmp.lt.u32.totalorder %s294_s20, %s406_s3 }
 0x313   :  { %p300_p9 = pnand %p298_p8, %p295_p7 }
 0x315   :  { %303 = shalt.err (!%p300_p9)
}
 0x316   :  { %201 = dma.vmem_to_hbm [thread:$0]  %s199_s17, 32, %s406_s3, [#allocation4]  }
 0x317   :  { %306 = dma.done.wait [#allocation4], 32  }
 0x318   :  { %307 = vsyncadd [#allocation4], 4294967264 }
 0x319   :  { %308 = dma.done.wait [#allocation7], 32  }
 0x31a   :  { %309 = vsyncadd [#allocation7], 4294967264 }
 0x31b   :  { %218 = vsyncpa [#allocation3], 1 }
 0x31c   :  { %219 = vsyncpa [#allocation4], 1 }
 0x31d   :  { %220 = vsyncpa [#allocation7], 1 }

</bundles_post_ra>
